<compile_context>
chip_gen: v6e
topology: v6e:2x2x1
jax: 0.10.0
libtpu: 0.0.40
codegen_flags: <defaults>
</compile_context>

<pallas_src>
import jax
import jax.numpy as jnp
from jax import lax
from jax.experimental import pallas as pl
from jax.experimental.pallas import tpu as pltpu


# ----------------------------------------------------------------------------
# Faithful reproduction of the PyTorch module semantics.
# ----------------------------------------------------------------------------
class Adversial_loss:
    def __init__(self):
        pass

    def forward(self):
        # Exact semantics of the PyTorch module: no inputs, no compute, returns None.
        return None


# ----------------------------------------------------------------------------
# Elementwise BCE-with-logits, numerically stable form:
#   per_elem = max(x, 0) - x*t + log1p(exp(-|x|))
# ----------------------------------------------------------------------------
def _bce_elem(x, t):
    x = x.astype(jnp.float32)
    t = jnp.asarray(t).astype(jnp.float32)
    return jnp.maximum(x, 0.0) - x * t + jnp.log1p(jnp.exp(-jnp.abs(x)))


# ----------------------------------------------------------------------------
# Kernel factory.  `tb` rows per grid step, accumulated in `sub`-row sub-slabs
# via a bounded fori_loop (caps vreg pressure, decouples DMA tile from the
# register working set).
# ----------------------------------------------------------------------------
def _make_kernel(tb, sub, dense):
    n_sub = tb // sub

    def kernel(x_ref, t_ref, out_ref, acc_ref):
        i = pl.program_id(1)

        @pl.when(i == 0)
        def _init():
            acc_ref[...] = jnp.zeros_like(acc_ref)

        if dense:
            def step(s):
                r = pl.multiple_of(s * sub, sub)
                x = x_ref[pl.ds(r, sub), :]
                t = t_ref[pl.ds(r, sub), :]
                acc_ref[...] += _bce_elem(x, t)
        else:
            t_scalar = t_ref[0, 0]  # SMEM scalar domain label (0.0 or 1.0)

            def step(s):
                r = pl.multiple_of(s * sub, sub)
                x = x_ref[pl.ds(r, sub), :]
                acc_ref[...] += _bce_elem(x, t_scalar)

        if n_sub == 1:
            step(0)
        else:
            def body(s, carry):
                step(s)
                return carry

            lax.fori_loop(0, n_sub, body, 0, unroll=min(4, n_sub))

        @pl.when(i == pl.num_programs(1) - 1)
        def _fin():
            # One cross-lane reduce per core, done exactly once; the partial sum is
            # broadcast into a full (8, 128) slab so the store is an aligned,
            # unmasked tile write.  The wrapper reads element [0, 0] of each slab.
            partial = jnp.sum(acc_ref[...])
            out_ref[...] = jnp.full(out_ref.shape, partial, dtype=jnp.float32)

    return kernel


# ----------------------------------------------------------------------------
# Wrapper helpers
# ----------------------------------------------------------------------------
def _num_tensorcores():
    """Detected TensorCore count per chip; falls back to 1 (v5e/v6e)."""
    try:
        info = pltpu.get_tpu_info()
    except Exception:
        return 1
    for attr in ("num_cores", "core_count", "tensorcore_count", "num_tensorcores"):
        n = getattr(info, attr, None)
        if isinstance(n, int) and n > 0:
            return n
    return 1


def _choose_tiling(B, F, bytes_per_row, tb, n_cores):
    assert B % 8 == 0 and F % 128 == 0, "B must be a multiple of 8 and F of 128"
    # TODO(synk): realistic DANN domain logits are [B, 1] / [B, 2]; padding them to
    # F % 128 == 0 would require masking padded elements out of both the sum and
    # the B*F divisor to keep the mean unbiased.
    rows_per_core = B // n_cores
    if tb is None:
        # ~8 MiB combined streamed bytes per grid step (single buffer); BlockSpec
        # double-buffering makes that ~16 MiB of streamed VMEM which, plus the small
        # accumulator / output slabs, stays inside the 48 MiB budget that is safe on
        # every chip (v7x has only 64 MiB physical VMEM per TC; v5e/v6e have 128 MiB).
        max_rows = max(8, ((8 << 20) // bytes_per_row) // 8 * 8)
        tb = 8
        for cand in (8192, 4096, 2048, 1024, 512, 256, 128, 64, 32, 16, 8):
            if cand <= max_rows and rows_per_core % cand == 0:
                tb = cand
                break
    assert tb % 8 == 0 and rows_per_core % tb == 0
    return tb, rows_per_core // tb


# ----------------------------------------------------------------------------
# Public wrapper
# ----------------------------------------------------------------------------
def adversarial_bce_loss(logits, targets, *, tb=None):
    """Mean BCE-with-logits over all elements (DANN adversarial / domain loss).

    logits:  [B, F] array (f32 or bf16); B % 8 == 0, F % 128 == 0.
    targets: either a dense [B, F] array of 0/1 labels (streamed as bf16), or a
             scalar constant domain label -- the scalar path keeps the label in
             SMEM and streams only the logits from HBM.
    Returns a scalar float32.
    """
    logits = jnp.asarray(logits)
    B, F = logits.shape
    dense = jnp.ndim(targets) == 2

    n_cores = _num_tensorcores()
    if n_cores < 2 or B % (8 * n_cores) != 0:
        n_cores = 1

    x_bytes = logits.dtype.itemsize
    if dense:
        # 0/1 domain labels are exact in bf16; halving the target stream cuts
        # dense-path HBM traffic (the binding resource on v5e/v6e) by ~25-33%.
        targets = jnp.asarray(targets).astype(jnp.bfloat16)
        assert targets.shape == (B, F)
        t_bytes = targets.dtype.itemsize
        bytes_per_row = F * (x_bytes + t_bytes)
    else:
        t_bytes = 0
        bytes_per_row = F * x_bytes

    tb, steps = _choose_tiling(B, F, bytes_per_row, tb, n_cores)
    sub = 32 if tb % 32 == 0 else (16 if tb % 16 == 0 else 8)
    grid = (n_cores, steps)

    x_spec = pl.BlockSpec((tb, F), lambda c, i: (c * steps + i, 0))
    # One (8, 128) output slab per core; each core writes only its own block in its
    # finalize step, so the split is safe under CORE_PARALLEL on multi-TC chips.
    out_spec = pl.BlockSpec((8, 128), lambda c, i: (c, 0))
    out_shape = jax.ShapeDtypeStruct((n_cores * 8, 128), jnp.float32)
    scratch_shapes = [pltpu.VMEM((sub, F), jnp.float32)]

    kernel = _make_kernel(tb, sub, dense)
    if dense:
        in_specs = [x_spec, pl.BlockSpec((tb, F), lambda c, i: (c * steps + i, 0))]
        operands = (logits, targets)
    else:
        t = jnp.full((1, 1), targets, dtype=jnp.float32)
        in_specs = [x_spec, pl.BlockSpec(memory_space=pltpu.MemorySpace.SMEM)]
        operands = (logits, t)

    bytes_accessed = (B * F * x_bytes + B * F * t_bytes
                      + n_cores * 8 * 128 * 4 + (0 if dense else 4))
    cost = pl.CostEstimate(
        flops=5 * B * F,
        transcendentals=2 * B * F,
        bytes_accessed=int(bytes_accessed),
    )

    # Explicit VMEM budget: double-buffered streams + accumulator + output slab,
    # plus margin, capped at 48 MiB (safe under v7x's 64 MiB physical VMEM/TC).
    tile_bytes = tb * bytes_per_row
    footprint = 2 * tile_bytes + sub * F * 4 + n_cores * 8 * 128 * 4
    vmem_limit = int(min(max(footprint + (8 << 20), 16 << 20), 48 << 20))

    if n_cores > 1:
        dim_sem = (pltpu.CORE_PARALLEL, pltpu.ARBITRARY)
    else:
        dim_sem = (pltpu.PARALLEL, pltpu.ARBITRARY)

    partial_rows = pl.pallas_call(
        kernel,
        out_shape=out_shape,
        grid_spec=pltpu.PrefetchScalarGridSpec(
            num_scalar_prefetch=0,
            grid=grid,
            in_specs=in_specs,
            out_specs=out_spec,
            scratch_shapes=scratch_shapes,
        ),
        compiler_params=pltpu.CompilerParams(
            dimension_semantics=dim_sem,
            vmem_limit_bytes=vmem_limit,
        ),
        cost_estimate=cost,
    )(*operands)

    # One partial sum per core lives at row 8*c, lane 0.
    partials = partial_rows[::8, 0]
    return jnp.sum(partials) / jnp.float32(B * F)


if __name__ == "__main__":
    key = jax.random.PRNGKey(0)
    k1, k2 = jax.random.split(key)

    # Small deterministic example inputs (multiples of the (8, 128) vreg tile).
    B, F = 64, 128
    logits = jax.random.normal(k1, (B, F), dtype=jnp.float32)
    targets = jax.random.bernoulli(k2, p=0.5, shape=(B, F)).astype(jnp.float32)

    # 1) Exact module semantics: forward() is a no-op returning None.
    mod = Adversial_loss()
    assert mod.forward() is None

    ref = jnp.mean(
        jnp.maximum(logits, 0.0) - logits * targets + jnp.log1p(jnp.exp(-jnp.abs(logits)))
    )

    # 2) Dense-target path, forced small tile (grid has several steps: exercises
    #    init/accumulate/finalize and the pipelined DMAs).
    loss_dense_small = adversarial_bce_loss(logits, targets, tb=16)
    jax.block_until_ready(loss_dense_small)
    assert jnp.allclose(loss_dense_small, ref, rtol=1e-5, atol=1e-5)

    # 3) Dense-target path, auto tile (exercises the inner fori_loop sub-slab path).
    loss_dense_auto = adversarial_bce_loss(logits, targets)
    jax.block_until_ready(loss_dense_auto)
    assert jnp.allclose(loss_dense_auto, ref, rtol=1e-5, atol=1e-5)

    # 4) Scalar-domain-target path (typical DANN usage: constant 0/1 label per call).
    loss_src = adversarial_bce_loss(logits, 1.0)
    jax.block_until_ready(loss_src)
    ref_src = jnp.mean(
        jnp.maximum(logits, 0.0) - logits * 1.0 + jnp.log1p(jnp.exp(-jnp.abs(logits)))
    )
    assert jnp.allclose(loss_src, ref_src, rtol=1e-5, atol=1e-5)

    print("KERNEL_OK")
</pallas_src>

<mosaic_0001>
module attributes {stable_mosaic.version = 11 : i64} {
  func.func @kernel(%arg0: i32, %arg1: i32, %arg2: memref<16x128xf32, #tpu.memory_space<vmem>>, %arg3: memref<16x128xbf16, #tpu.memory_space<vmem>>, %arg4: memref<8x128xf32, #tpu.memory_space<vmem>>, %arg5: memref<16x128xf32, #tpu.memory_space<vmem>>) attributes {dimension_semantics = [#tpu.dimension_semantics<parallel>, #tpu.dimension_semantics<arbitrary>], iteration_bounds = array<i64: 1, 4>, scalar_prefetch = 0 : i64, scratch_operands = 1 : i64, tpu.core_type = #tpu.core_type<tc>, window_params = [{transform_indices = @transform_0, window_bounds = array<i64: 16, 128>}, {transform_indices = @transform_1, window_bounds = array<i64: 16, 128>}, {transform_indices = @transform_2, window_bounds = array<i64: 8, 128>}]} {
    %c0_i32 = arith.constant 0 : i32
    %0 = arith.cmpi eq, %arg1, %c0_i32 : i32
    %1 = arith.extui %0 : i1 to i32
    %c0_i32_0 = arith.constant 0 : i32
    %2 = arith.cmpi ne, %1, %c0_i32_0 : i32
    scf.if %2 {
      %cst_9 = arith.constant 0.000000e+00 : f32
      %25 = vector.broadcast %cst_9 : f32 to vector<16x128xf32>
      %c0_10 = arith.constant 0 : index
      %c0_11 = arith.constant 0 : index
      %26 = vector.load %arg5[%c0_10, %c0_11] : memref<16x128xf32, #tpu.memory_space<vmem>>, vector<16x128xf32>
      tpu.vector_store %arg5[%c0_10, %c0_11], %25 {strides = array<i32>} : memref<16x128xf32, #tpu.memory_space<vmem>>, vector<16x128xf32>,
    } else {
    }
    %c0_i32_1 = arith.constant 0 : i32
    %3 = tpu.assume_multiple %c0_i32_1, 16 : i32
    %4 = arith.index_cast %3 : i32 to index
    %c0 = arith.constant 0 : index
    %5 = vector.load %arg2[%4, %c0] : memref<16x128xf32, #tpu.memory_space<vmem>>, vector<16x128xf32>
    %6 = arith.index_cast %3 : i32 to index
    %c0_2 = arith.constant 0 : index
    %7 = vector.load %arg3[%6, %c0_2] : memref<16x128xbf16, #tpu.memory_space<vmem>>, vector<16x128xbf16>
    %c0_3 = arith.constant 0 : index
    %c0_4 = arith.constant 0 : index
    %8 = vector.load %arg5[%c0_3, %c0_4] : memref<16x128xf32, #tpu.memory_space<vmem>>, vector<16x128xf32>
    %9 = arith.extf %7 : vector<16x128xbf16> to vector<16x128xf32>
    %cst = arith.constant 0.000000e+00 : f32
    %10 = vector.broadcast %cst : f32 to vector<16x128xf32>
    %11 = arith.maximumf %5, %10 : vector<16x128xf32>
    %12 = arith.mulf %5, %9 : vector<16x128xf32>
    %13 = arith.subf %11, %12 : vector<16x128xf32>
    %14 = math.absf %5 : vector<16x128xf32>
    %cst_5 = arith.constant 0.000000e+00 : f32
    %15 = vector.broadcast %cst_5 : f32 to vector<16x128xf32>
    %16 = arith.subf %15, %14 : vector<16x128xf32>
    %17 = math.exp %16 : vector<16x128xf32>
    %18 = math.log1p %17 : vector<16x128xf32>
    %19 = arith.addf %13, %18 : vector<16x128xf32>
    %20 = arith.addf %8, %19 : vector<16x128xf32>
    %c0_6 = arith.constant 0 : index
    %c0_7 = arith.constant 0 : index
    %21 = vector.load %arg5[%c0_6, %c0_7] : memref<16x128xf32, #tpu.memory_space<vmem>>, vector<16x128xf32>
    tpu.vector_store %arg5[%c0_6, %c0_7], %20 {strides = array<i32>} : memref<16x128xf32, #tpu.memory_space<vmem>>, vector<16x128xf32>,
    %c3_i32 = arith.constant 3 : i32
    %22 = arith.cmpi eq, %arg1, %c3_i32 : i32
    %23 = arith.extui %22 : i1 to i32
    %c0_i32_8 = arith.constant 0 : i32
    %24 = arith.cmpi ne, %23, %c0_i32_8 : i32
    scf.if %24 {
      %c0_9 = arith.constant 0 : index
      %c0_10 = arith.constant 0 : index
      %25 = vector.load %arg5[%c0_9, %c0_10] : memref<16x128xf32, #tpu.memory_space<vmem>>, vector<16x128xf32>
      %26 = vector.shape_cast %25 : vector<16x128xf32> to vector<1x16x128xf32>
      %cst_11 = arith.constant dense<0.000000e+00> : vector<1xf32>
      %27 = vector.multi_reduction <add>, %26, %cst_11 [1, 2] : vector<1x16x128xf32> to vector<1xf32>
      %28 = vector.shape_cast %27 : vector<1xf32> to vector<1x1x1xf32>
      %29 = vector.extract %28[0, 0, 0] : f32 from vector<1x1x1xf32>
      %30 = vector.broadcast %29 : f32 to vector<8x128xf32>
      %c0_12 = arith.constant 0 : index
      %c0_13 = arith.constant 0 : index
      %31 = vector.load %arg4[%c0_12, %c0_13] : memref<8x128xf32, #tpu.memory_space<vmem>>, vector<8x128xf32>
      tpu.vector_store %arg4[%c0_12, %c0_13], %30 {strides = array<i32>} : memref<8x128xf32, #tpu.memory_space<vmem>>, vector<8x128xf32>,
    } else {
    }
    return
  }
  func.func @transform_0(%arg0: i32, %arg1: i32) -> (i32, i32) {
    %c4_i32 = arith.constant 4 : i32
    %0 = arith.muli %arg0, %c4_i32 : i32
    %1 = arith.addi %0, %arg1 : i32
    %c0_i32 = arith.constant 0 : i32
    %c0_i32_0 = arith.constant 0 : i32
    return %1, %c0_i32 : i32, i32
  }
  func.func @transform_1(%arg0: i32, %arg1: i32) -> (i32, i32) {
    %c4_i32 = arith.constant 4 : i32
    %0 = arith.muli %arg0, %c4_i32 : i32
    %1 = arith.addi %0, %arg1 : i32
    %c0_i32 = arith.constant 0 : i32
    %c0_i32_0 = arith.constant 0 : i32
    return %1, %c0_i32 : i32, i32
  }
  func.func @transform_2(%arg0: i32, %arg1: i32) -> (i32, i32) {
    %c0_i32 = arith.constant 0 : i32
    %c0_i32_0 = arith.constant 0 : i32
    return %arg0, %c0_i32 : i32, i32
  }
}

</mosaic_0001>

<bundles_post_ra>
// kernel: tpu_custom_call.1
= control target key start
LH: loop header
LB: loop body
LE: loop exit
PB: predicated region body
PF: predicated region fallthrough
CT: control target
= control target key end

     0   :  { %7 = vsyncpa [#allocation4], 0  ;;  %s801_s0 = inlined_call_operand.hbm [shape: f32[64,128], index: 0, kind: input, shape index: {}]   ;;  %s802_s1 = inlined_call_operand.hbm [shape: bf16[64,128], index: 1, kind: input, shape index: {}]   ;;  %s803_s2 = inlined_call_operand.hbm [shape: f32[8,128], index: 2, kind: output, shape index: {}]  }
   0x1   :  { %9 = vsyncpa [#allocation4 + $0x1], 0 }
   0x2   :  { %10 = vsyncpa [#allocation7], 0 }
   0x3   :  { %12 = vsyncpa [#allocation7 + $0x1], 0 }
   0x4   :  { %13 = vsyncpa [#allocation5], 0  ;;  %s661_s9 = smov 0   ;;  %s663_s10 = smov 0  }
   0x5   :  { %s665_s11 = smov 0   ;;  %s667_s12 = smov 0  }
   0x6   :  { %s669_s13 = smov 0   ;;  %s671_s14 = smov 0  }
   0x7 LB: > { %s392_s15 = sadd.s32 4294967295, %s636_s14   ;;  %s28_s16 = sadd.s32 1, %s632_s13  ;;  %s636_s14 = sphi %s671_s14, %s19_s14   ;;  %s632_s13 = sphi %s669_s13, %s813_s13   ;;  %s628_s12 = sphi %s667_s12, %s812_s12   ;;  %s624_s11 = sphi %s665_s11, %s811_s11   ;;  %s620_s10 = sphi %s663_s10, %s810_s10   ;;  %s616_s9 = sphi %s661_s9, %s809_s9  }
   0x8   : > { %p29_p0 = scmp.ge.s32.totalorder %s28_s16, 4  ;;  %s42_s17 = sadd.s32 1, %s624_s11 }
   0x9   : > { %p49_p1 = scmp.ne.s32.totalorder %s624_s11, %s620_s10  ;;  %p50_p2 = scmp.eq.s32.totalorder %s636_s14, 0 }
   0xa   : > { %s815_s16 = smov (%p29_p0, %s28_s16), 0  ;;  %p55_p4 = scmp.ne.s32.totalorder %s620_s10, %s616_s9 }
   0xb   : > { %p697_p3 = por %p50_p2, %p49_p1  ;;  %s39_s19 = ssub.s32 %s632_s13, %s815_s16 }
   0xc   : > { %p56_p5 = scmp.eq.s32.totalorder %s392_s15, 0  ;;  %p40_p6 = scmp.eq.s32.totalorder %s39_s19, 0 }
   0xd   : > { %p433_p8 = scmp.lt.s32.totalorder %s636_s14, 4  ;;  %s715_s22 = sand.u32 1, %s624_s11  }
   0xe   : > { %p706_p7 = por %p56_p5, %p55_p4  ;;  %s410_s23 = sshll.u32 %s632_s13, 8 }
   0xf   : > { %s712_s21 = scalar_select %p40_p6, %s624_s11, %s42_s17  }
  0x10   : > { %s395_s24 = sshll.u32 %s715_s22, 4  ;;  %s147_s27 = scalar_lea.hbm %s801_s0, %s410_s23 }
  0x11   : > { %s139_s28 = scalar_lea.vmem [#allocation3], %s395_s24  ;;  %p724_p9 = pnand %p433_p8, %p697_p3 }
  0x12   : > { %s148_s29 = sshll.u32 %s139_s28, 4  ;;  %s136_s3 = scalar_lea.sflag [#allocation4], %s715_s22  ;;  %s149_s29 = int_to_ptr.vmem [resolvable:$true] %s148_s29 }
  0x13   : > { %p500_p10 = pneg %p724_p9  ;;  %s511_s4 = scalar_lea.vmem %s149_s29, 256 }
  0x14   : > { %p512_p11 = scmp.ne.s32.totalorder %s149_s29, %s511_s4  ;;  %s638_s5 = smov [#allocation3]  }
  0x15   : > { %s516_s6 = sshll.u32 %s638_s5, 4  ;;  %s517_s6 = int_to_ptr.vmem [resolvable:$false] %s516_s6 }
  0x16   : > { %p514_p12 = pnand %p512_p11, %p500_p10  ;;  %s518_s7 = scalar_lea.vmem %s517_s6, 512 }
  0x17   : > { %p519_p0 = scmp.lt.s32.totalorder %s149_s29, %s517_s6  ;;  %p520_p1 = scmp.lt.s32.totalorder %s518_s7, %s511_s4 }
  0x18   : > { %p515_p13 = pneg %p514_p12 }
  0x19   : > { %p521_p2 = por %p520_p1, %p519_p0 }
  0x1b   : > { %p522_p3 = pnand %p521_p2, %p515_p13 }
  0x1d   : > { %525 = shalt.err (!%p522_p3)
}
  0x1e   : > { %s639_s8 = smov 128   ;;  %s640_s9 = smov 8  }
  0x1f   : > { %429 = dma.hbm_to_vmem [thread:$0]  (!%p724_p9), %s147_s27, 256, %s149_s29, %s136_s3, %s639_s8, %s639_s8, %s640_s9  }
  0x20   : > { %p401_p4 = scmp.ge.s32.totalorder %s636_s14, 1  ;;  %p179_p5 = scmp.lt.s32.totalorder %s636_s14, 5 }
  0x21   : > { %s398_s17 = sshll.u32 %s715_s22, 3  ;;  %s411_s19 = sshll.u32 %s632_s13, 7 }
  0x22   : > { %p739_p6 = pnand %p401_p4, %p179_p5  ;;  %s162_s23 = scalar_lea.vmem [#allocation6], %s398_s17 }
  0x23   : > { %s171_s24 = sshll.u32 %s162_s23, 4  ;;  %s170_s28 = scalar_lea.hbm %s802_s1, %s411_s19  ;;  %s172_s24 = int_to_ptr.vmem [resolvable:$true] %s171_s24 }
  0x24   : > { %s159_s4 = scalar_lea.sflag [#allocation7], %s715_s22  ;;  %s539_s5 = scalar_lea.vmem %s172_s24, 128 }
  0x25   : > { %p540_p8 = scmp.ne.s32.totalorder %s172_s24, %s539_s5  ;;  %s641_s27 = smov [#allocation6]  }
  0x26   : > { %s544_s29 = sshll.u32 %s641_s27, 4  ;;  %s545_s29 = int_to_ptr.vmem [resolvable:$false] %s544_s29 }
  0x27   : > { %p542_p11 = pnand %p540_p8, %p500_p10  ;;  %s546_s3 = scalar_lea.vmem %s545_s29, 256 }
  0x28   : > { %p547_p13 = scmp.lt.s32.totalorder %s172_s24, %s545_s29  ;;  %p548_p0 = scmp.lt.s32.totalorder %s546_s3, %s539_s5 }
  0x29   : > { %p543_p12 = pneg %p542_p11 }
  0x2a   : > { %p549_p1 = por %p548_p0, %p547_p13 }
  0x2c   : > { %p550_p2 = pnand %p549_p1, %p543_p12 }
  0x2e   : > { %553 = shalt.err (!%p550_p2)
}
  0x2f   : > { %s642_s6 = smov 64   ;;  %s643_s7 = smov 4  }
  0x30   : > { %432 = dma.hbm_to_vmem [thread:$0]  (!%p724_p9), %s170_s28, 128, %s172_s24, %s159_s4, %s642_s6, %s642_s6, %s643_s7  }
  0x31   : > { %183 = sbr.rel (%p739_p6) target bundleno = 339 (0x153), region = 28  ;;  %s185_s22 = sand.u32 (!%p739_p6), 1, %s620_s10  }
  0x32   : > { %s402_s8 = sshll.u32 (!%p739_p6), %s185_s22, 4  ;;  %s186_s9 = scalar_lea.sflag (!%p739_p6), [#allocation4], %s185_s22 }
  0x33   : > { %s189_s17 = scalar_lea.vmem (!%p739_p6), [#allocation3], %s402_s8 }
  0x36   : > { %603 = dma.done.wait (%p706_p7), %s186_s9, 256  }
  0x37   : > { %605 = vsyncadd (%p706_p7), %s186_s9, 4294967040  ;;  %s403_s19 = sshll.u32 %s185_s22, 3  ;;  %s195_s23 = scalar_lea.sflag [#allocation7], %s185_s22 }
  0x38   : > { %s198_s25 = scalar_lea.vmem [#allocation6], %s403_s19 }
  0x39   : > { %607 = dma.done.wait (%p706_p7), %s195_s23, 128  }
  0x3a   : > { %609 = vsyncadd (%p706_p7), %s195_s23, 4294967168  ;;  %p404_p9 = scmp.ne.s32.totalorder %s628_s12, 0 }
  0x3c   : > { %228 = sbr.rel (%p404_p9) target bundleno = 67 (0x43), region = 40 }
  0x41   : > { %v644_v0 = vmov 0.0  }
  0x42   : > { %229 = vst [vmem:[#allocation2] sm:$0xff] %v644_v0  ;;  %230 = vst [vmem:[#allocation2 + $0x8] sm:$0xff] %v644_v0 }
  0x43 PF: > { %v231_v1 = vld [vmem:[%s189_s17] sm:$0xff]  ;;  %v232_v3 = vld [vmem:[%s189_s17 + $0x8] sm:$0xff]  ;;  %p405_p7 = scmp.ne.s32.totalorder %s628_s12, 3 }
  0x44   : > { %v245_v2 = vand.u32 2147483647, %v231_v1  ;;  %v246_v4 = vand.u32 2147483647, %v232_v3  ;;  %v413_v13 = vld [vmem:[%s198_s25] sm:$0xff]   ;;  %v239_v19 = vmax.f32 %v231_v1, 0.0 }
  0x45   : > { %v414_v15 = vunpack.c.l.bf16 %v413_v13  ;;  %v415_v17 = vunpack.c.h.bf16 %v413_v13  ;;  %v240_v23 = vmax.f32 %v232_v3, 0.0 }
  0x46   : > { %v247_v5 = vsub.f32 0.0, %v245_v2  ;;  %v248_v6 = vsub.f32 0.0, %v246_v4 }
  0x47   : > { %v241_v20 = vmul.f32 %v414_v15, %v231_v1  ;;  %v242_v24 = vmul.f32 %v415_v17, %v232_v3 }
  0x48   : > { %v249_v7 = vmul.f32 1.442695, %v247_v5  ;;  %v251_v8 = vmul.f32 1.442695, %v248_v6 }
  0x49   : > { %v243_v28 = vsub.f32 %v239_v19, %v241_v20  ;;  %v244_v32 = vsub.f32 %v240_v23, %v242_v24  ;;  %v235_v34 = vld [vmem:[#allocation2] sm:$0xff]  ;;  %v236_v37 = vld [vmem:[#allocation2 + $0x8] sm:$0xff] }
  0x4a   : > { %490 = vpow2.f32 %v249_v7 }
  0x4b   : > { %492 = vpow2.f32 %v251_v8 }
  0x57   : > { %v491_v9 = vpop.eup %490 }
  0x58   : > { %v493_v10 = vpop.eup %492  ;;  %v253_v11 = vadd.f32 1.0, %v491_v9  ;;  %v256_v14 = vmul.f32 -0.5, %v491_v9  ;;  %v259_v21 = vand.u32 2147483647, %v491_v9 }
  0x59   : > { %v262_v12 = vadd.f32 1.0, %v493_v10  ;;  %v265_v16 = vmul.f32 -0.5, %v493_v10  ;;  %v268_v25 = vand.u32 2147483647, %v493_v10 }
  0x5a   : > { %494 = vlog2.f32 %v253_v11  ;;  %v257_v18 = vadd.f32 1.0, %v256_v14  ;;  %vm260_vm0 = vcmp.lt.f32.partialorder %v259_v21, 0.0004427343 }
  0x5b   : > { %496 = vlog2.f32 %v262_v12  ;;  %v266_v22 = vadd.f32 1.0, %v265_v16  ;;  %vm269_vm1 = vcmp.lt.f32.partialorder %v268_v25, 0.0004427343 }
  0x5c   : > { %v258_v26 = vmul.f32 %v491_v9, %v257_v18 }
  0x5d   : > { %v267_v29 = vmul.f32 %v493_v10, %v266_v22 }
  0x67   : > { %v495_v27 = vpop.eup %494 }
  0x68   : > { %v497_v30 = vpop.eup %496  ;;  %v255_v31 = vmul.f32 0.6931472, %v495_v27 }
  0x69   : > { %v264_v33 = vmul.f32 0.6931472, %v497_v30 }
  0x6a   : > { %v261_v35 = vsel %vm260_vm0, %v258_v26, %v255_v31 }
  0x6b   : > { %v271_v36 = vadd.f32 %v261_v35, %v243_v28  ;;  %v270_v38 = vsel %vm269_vm1, %v267_v29, %v264_v33 }
  0x6c   : > { %v272_v39 = vadd.f32 %v270_v38, %v244_v32  ;;  %280 = sbr.rel (%p405_p7) target bundleno = 324 (0x144), region = 44 }
  0x6d   : > { %v273_v40 = vadd.f32 %v271_v36, %v235_v34 }
  0x6e   : > { %v274_v41 = vadd.f32 %v272_v39, %v236_v37 }
  0x6f   : > { %275 = vst [vmem:[#allocation2] sm:$0xff] %v273_v40 }
  0x70   : > { %276 = vst [vmem:[#allocation2 + $0x8] sm:$0xff] %v274_v41 }
  0x76   : > { %v281_v42 = vld [vmem:[#allocation2] sm:$0xff] }
  0x77   : > { %v282_v43 = vld [vmem:[#allocation2 + $0x8] sm:$0xff] }
  0x78   : > { %v283_v44 = vadd.f32 %v282_v43, %v281_v42 }
  0x7a   : > { %284 = vadd.xlane.f32.xlu0 %v283_v44 }
 0x103   : > { %v285_v45 = vpop.xlane.xlu0 %284 }
 0x104   : > { %v286_v46 = vrot.slane %v285_v45, 4 }
 0x106   : > { %v287_v47 = vadd.f32 %v286_v46, %v285_v45 }
 0x108   : > { %v288_v48 = vrot.slane %v287_v47, 2 }
 0x10a   : > { %v289_v49 = vadd.f32 %v288_v48, %v287_v47 }
 0x10c   : > { %v290_v50 = vrot.slane %v289_v49, 1 }
 0x10e   : > { %v291_v51 = vadd.f32 %v290_v50, %v289_v49 }
 0x110   : > { %416 = vpush %v291_v51 }
 0x141   : > { %s417_s20 = spop %416 }
 0x142   : > { %v293_v52 = vstv %s417_s20 }
 0x143   : > { %294 = vst [vmem:[#allocation8] sm:$0xff] %v293_v52 }
 0x144 PF: > { %p768_p10 = scmp.eq.s32.totalorder %s392_s15, 3  ;;  %s645_s30 = smov [#allocation8]  }
 0x145   : > { %s304_s18 = sshll.u32 %s645_s30, 4  ;;  %s305_s18 = int_to_ptr.vmem [resolvable:$true] %s304_s18 }
 0x146   : > { %s554_s24 = scalar_lea.vmem %s305_s18, 128  ;;  %p561_p6 = scmp.lt.s32.totalorder %s305_s18, %s305_s18 }
 0x147   : > { %p555_p3 = scmp.ne.s32.totalorder %s305_s18, %s554_s24  ;;  %p562_p8 = scmp.lt.s32.totalorder %s554_s24, %s554_s24 }
 0x149   : > { %p556_p4 = pnand %p555_p3, %p768_p10  ;;  %p563_p11 = por %p562_p8, %p561_p6 }
 0x14b   : > { %p557_p5 = pneg %p556_p4 }
 0x14d   : > { %p564_p12 = pnand %p563_p11, %p557_p5 }
 0x14f   : > { %567 = shalt.err (!%p564_p12)
}
 0x150   : > { %423 = dma.vmem_to_hbm [thread:$0]  (%p768_p10), %s305_s18, 128, %s803_s2, [#allocation5]  }
 0x151   : > { %611 = dma.done.wait (%p768_p10), [#allocation5], 128  }
 0x152   : > { %613 = vsyncadd (%p768_p10), [#allocation5], 4294967168 }
 0x153 PF: > { %s19_s14 = sadd.s32 1, %s636_s14   ;;  %s809_s9 = smov %s620_s10 }
 0x154   : > { %p16_p13 = scmp.ge.s32.totalorder %s19_s14, 6   ;;  %s810_s10 = smov %s624_s11 }
 0x155   : > { %s811_s11 = smov %s712_s21  ;;  %s812_s12 = smov %s632_s13 }
 0x156   : > { %s813_s13 = smov %s815_s16  ;;  %18 = sbr.rel (!%p16_p13) target bundleno = 7 (0x7), region = 87 }
 0x15b   :  { %317 = vsyncpa [#allocation4], 1 }
 0x15c   :  { %319 = vsyncpa [#allocation4 + $0x1], 1 }
 0x15d   :  { %320 = vsyncpa [#allocation7], 1 }
 0x15e   :  { %322 = vsyncpa [#allocation7 + $0x1], 1 }
 0x15f   :  { %323 = vsyncpa [#allocation5], 1 }
 0x160   :  { %325 = vsyncpa [#allocation5 + $0x1], 1 }

</bundles_post_ra>
